<compile_context>
chip_gen: v6e
topology: v6e:2x2x1
jax: 0.10.0
libtpu: 0.0.40
codegen_flags: <defaults>
</compile_context>

<pallas_src>
import functools

import jax
import jax.numpy as jnp
from jax.experimental import pallas as pl
from jax.experimental.pallas import tpu as pltpu

_LANE = 128
_SUBLANE = 8


def _round_up(v: int, m: int) -> int:
    return (v + m - 1) // m * m


def _tpu_generation():
    """Best-effort TPU generation from device_kind; None if unknown."""
    try:
        kind = jax.devices()[0].device_kind.lower()
    except Exception:
        return None
    for tag, gen in (("v7", 7), ("7x", 7), ("v6", 6), ("v5", 5), ("v4", 4)):
        if tag in kind:
            return gen
    return None


def _vmem_capacity_bytes(gen):
    """Per-TensorCore VMEM capacity (bytes), conservative fallback."""
    try:
        cap = int(pltpu.get_tpu_info().vmem_capacity_bytes)
        if cap > 0:
            return cap
    except Exception:
        pass
    if gen is not None and gen >= 7:
        return 64 * 1024 * 1024    # v7x: 64 MiB / TC
    if gen in (5, 6):
        return 128 * 1024 * 1024   # v5e / v6e: 128 MiB
    return 64 * 1024 * 1024        # unknown: be conservative


def _pick_tm(batch, gen):
    """Generation-aware batch-tile size (rows per grid step)."""
    b8 = _round_up(max(batch, 1), _SUBLANE)
    if gen is None or gen <= 5:
        cap = 128   # v5e: M=128 already fills the 4x128x128 MXU
    elif gen == 6:
        cap = 512   # v6e: 256-wide MXU; large TM amortizes ~0.35us/grid-step
    else:
        cap = 256   # v7x: 256-wide MXU, but only 64 MiB VMEM / TC
    tm = min(cap, b8)
    if gen is not None and gen >= 7:
        # v7x has 2 TensorCores: make sure the "parallel" batch axis has
        # at least 2 tiles whenever the batch allows it.
        while tm > _SUBLANE and pl.cdiv(batch, tm) < 2:
            tm = max(_SUBLANE, _round_up(tm // 2, _SUBLANE))
    return tm


def _fused_mlp_kernel(*refs, n_layers: int):
    # refs = (x_ref, w0, b0, w1, b1, ..., w_{L-1}, b_{L-1}, o_ref)
    x_ref = refs[0]
    o_ref = refs[-1]
    wb_refs = refs[1:-1]

    act = x_ref[...]                      # (TM, D0) bf16 (unpadded K)
    for layer in range(n_layers):
        w_ref = wb_refs[2 * layer]        # (D_in, D_out_pad) bf16, VMEM-resident
        b_ref = wb_refs[2 * layer + 1]    # (1,    D_out_pad) f32,  VMEM-resident
        acc = jnp.dot(act, w_ref[...], preferred_element_type=jnp.float32)
        acc = acc + b_ref[...]            # f32 epilogue
        if layer < n_layers - 1:
            acc = jnp.maximum(acc, 0.0)   # ReLU on hidden layers only
            act = acc.astype(jnp.bfloat16)  # exactly one cast per layer
        else:
            act = acc
    o_ref[...] = act.astype(o_ref.dtype)


def _resident_spec(arr, single_buffer):
    """Full-array, VMEM-resident block spec (constant index map)."""
    ndim = arr.ndim
    idx_map = lambda i: (0,) * ndim
    if single_buffer:
        # Constant index map => block never changes; one buffer is enough.
        return pl.BlockSpec(arr.shape, idx_map, pipeline_mode=pl.Buffered(1))
    return pl.BlockSpec(arr.shape, idx_map)


def _fused_mlp_call(x, weights, biases, *, tm, single_buffer_resident):
    """x: (B_pad, D0) bf16 (D0 unpadded). weights[i]: (D_i, D_{i+1}_pad) bf16.
    biases[i]: (1, D_{i+1}_pad) f32. Returns (B_pad, D_last_pad) f32."""
    n_layers = len(weights)
    b_pad, d_in = x.shape
    d_out = weights[-1].shape[1]
    assert b_pad % tm == 0

    # Streamed activation tile (default double-buffered; bump to
    # pipeline_mode=pl.Buffered(3) only if profiling shows exposed input DMA).
    in_specs = [pl.BlockSpec((tm, d_in), lambda i: (i, 0))]
    operands = [x]
    for w, b in zip(weights, biases):
        in_specs.append(_resident_spec(w, single_buffer_resident))
        in_specs.append(_resident_spec(b, single_buffer_resident))
        operands.append(w)
        operands.append(b)
    out_specs = pl.BlockSpec((tm, d_out), lambda i: (i, 0))

    flops = 2 * b_pad * sum(w.shape[0] * w.shape[1] for w in weights)
    bytes_accessed = (x.size * x.dtype.itemsize
                      + sum(w.size * w.dtype.itemsize for w in weights)
                      + sum(b.size * b.dtype.itemsize for b in biases)
                      + b_pad * d_out * 4)

    # Generation-aware VMEM budget.
    gen = _tpu_generation()
    vmem_cap = _vmem_capacity_bytes(gen)
    wbuf = 1 if single_buffer_resident else 2
    widths = [d_in] + [w.shape[1] for w in weights]
    block_bytes = (2 * tm * d_in * x.dtype.itemsize                 # x (2 bufs)
                   + wbuf * sum(w.size * w.dtype.itemsize for w in weights)
                   + wbuf * sum(b.size * b.dtype.itemsize for b in biases)
                   + 2 * tm * d_out * 4                             # out (2 bufs)
                   + 2 * tm * max(widths) * 4)                      # live acts
    vmem_limit = int(min(max(32 * 1024 * 1024, 2 * block_bytes),
                         int(0.8 * vmem_cap)))

    kernel = functools.partial(_fused_mlp_kernel, n_layers=n_layers)
    return pl.pallas_call(
        kernel,
        out_shape=jax.ShapeDtypeStruct((b_pad, d_out), jnp.float32),
        grid_spec=pl.GridSpec(
            grid=(b_pad // tm,),
            in_specs=in_specs,
            out_specs=out_specs,
        ),
        compiler_params=pltpu.CompilerParams(
            dimension_semantics=("parallel",),
            vmem_limit_bytes=vmem_limit,
        ),
        cost_estimate=pl.CostEstimate(
            flops=flops, transcendentals=0, bytes_accessed=bytes_accessed),
    )(*operands)


def fused_mlp(x, weights, biases, *, tm):
    try:
        return _fused_mlp_call(x, weights, biases, tm=tm,
                               single_buffer_resident=True)
    except Exception:
        # Fallback if `pipeline_mode=pl.Buffered(1)` is unsupported by the
        # running JAX/Mosaic version; semantics are identical.
        return _fused_mlp_call(x, weights, biases, tm=tm,
                               single_buffer_resident=False)


class FCNPallas:
    """JAX/Pallas equivalent of the PyTorch FCN module (forward pass)."""

    def __init__(self, dim_X, dim_y, hidden_layers=(256,), key=None):
        self.dim_X = dim_X
        self.dim_y = dim_y
        self.hidden_layers = tuple(hidden_layers)
        self.network_structure = [dim_X] + list(hidden_layers) + [dim_y]
        if key is None:
            key = jax.random.PRNGKey(0)

        # torch.nn.Linear-style init: U(-1/sqrt(fan_in), 1/sqrt(fan_in)).
        self.params_f32 = []
        for i in range(len(self.network_structure) - 1):
            fan_in = self.network_structure[i]
            fan_out = self.network_structure[i + 1]
            key, kw, kb = jax.random.split(key, 3)
            bound = 1.0 / (fan_in ** 0.5)
            w = jax.random.uniform(kw, (fan_in, fan_out), jnp.float32,
                                   minval=-bound, maxval=bound)
            b = jax.random.uniform(kb, (fan_out,), jnp.float32,
                                   minval=-bound, maxval=bound)
            self.params_f32.append((w, b))

        # Padding scheme: input K stays UNPADDED (streamed as-is); hidden and
        # output feature dims are zero-padded to 128 lanes.  Zero padding keeps
        # the math exact: padded weight rows/cols contribute 0 and padded
        # hidden columns stay 0 through bias(0) and ReLU.
        self.padded_dims = [self.network_structure[0]] + [
            _round_up(d, _LANE) for d in self.network_structure[1:]]
        self.weights_bf16 = []
        self.biases_f32 = []
        for i, (w, b) in enumerate(self.params_f32):
            din_p, dout_p = self.padded_dims[i], self.padded_dims[i + 1]
            w_p = jnp.zeros((din_p, dout_p), jnp.float32)
            w_p = w_p.at[: w.shape[0], : w.shape[1]].set(w)
            b_p = jnp.zeros((1, dout_p), jnp.float32)
            b_p = b_p.at[0, : b.shape[0]].set(b)
            self.weights_bf16.append(w_p.astype(jnp.bfloat16))
            self.biases_f32.append(b_p)

        self._gen = _tpu_generation()

    def __call__(self, X):
        B, din = X.shape
        assert din == self.dim_X
        tm = _pick_tm(B, self._gen)
        b_pad = _round_up(B, tm)
        x = X.astype(jnp.bfloat16)            # halve activation HBM traffic
        if b_pad != B:
            x = jnp.pad(x, ((0, b_pad - B), (0, 0)))  # batch-only pad, no K pad
        out_pad = fused_mlp(x, self.weights_bf16, self.biases_f32, tm=tm)
        return out_pad[:B, : self.dim_y]


def _reference_forward_bf16(weights_bf16, biases_f32, x_bf16):
    """Same bf16-weight / bf16-activation / f32-accumulate math as the kernel."""
    feat = x_bf16
    n = len(weights_bf16)
    for i, (w, b) in enumerate(zip(weights_bf16, biases_f32)):
        feat = jnp.dot(feat, w, preferred_element_type=jnp.float32) + b
        if i < n - 1:
            feat = jnp.maximum(feat, 0.0).astype(jnp.bfloat16)
    return feat


def _reference_forward_f32(params_f32, X):
    """Semantic reference matching the PyTorch FCN forward in f32."""
    feat = X
    n = len(params_f32)
    for i, (w, b) in enumerate(params_f32):
        feat = feat @ w + b
        if i < n - 1:
            feat = jnp.maximum(feat, 0.0)
    return feat


if __name__ == "__main__":
    # Small shapes consistent with the module: batch=16, dim_X=32,
    # hidden_layers=(256,), dim_y=8.
    batch, dim_X, dim_y = 16, 32, 8
    hidden = (256,)

    key = jax.random.PRNGKey(0)
    k_model, k_data = jax.random.split(key)

    model = FCNPallas(dim_X, dim_y, hidden_layers=hidden, key=k_model)
    X = jax.random.normal(k_data, (batch, dim_X), dtype=jnp.float32)

    out = jax.block_until_ready(model(X))
    assert out.shape == (batch, dim_y), out.shape

    # 1) Exact-path check: same padded bf16 params, same math, in plain jnp.
    ref_bf16 = _reference_forward_bf16(
        model.weights_bf16, model.biases_f32,
        X.astype(jnp.bfloat16))[:, :dim_y]
    assert jnp.allclose(out, ref_bf16, atol=5e-3, rtol=5e-3), \
        "mismatch vs bf16-path reference"

    # 2) Semantic check vs the f32 FCN forward (tolerance covers bf16 params).
    ref_f32 = _reference_forward_f32(model.params_f32, X)
    assert jnp.allclose(out, ref_f32, atol=3e-2, rtol=3e-2), \
        "mismatch vs f32 reference"

    print("KERNEL_OK")
</pallas_src>

<mosaic_0001>
module attributes {stable_mosaic.version = 11 : i64} {
  func.func @_fused_mlp_kernel(%arg0: i32, %arg1: memref<16x32xbf16, #tpu.memory_space<vmem>>, %arg2: memref<32x256xbf16, #tpu.memory_space<vmem>>, %arg3: memref<1x256xf32, #tpu.memory_space<vmem>>, %arg4: memref<256x128xbf16, #tpu.memory_space<vmem>>, %arg5: memref<1x128xf32, #tpu.memory_space<vmem>>, %arg6: memref<16x128xf32, #tpu.memory_space<vmem>>) attributes {dimension_semantics = [#tpu.dimension_semantics<parallel>], iteration_bounds = array<i64: 1>, scalar_prefetch = 0 : i64, scratch_operands = 0 : i64, tpu.core_type = #tpu.core_type<tc>, window_params = [{transform_indices = @transform_0, window_bounds = array<i64: 16, 32>}, {pipeline_mode = #tpu.pipeline_mode<synchronous>, transform_indices = @transform_1, window_bounds = array<i64: 32, 256>}, {pipeline_mode = #tpu.pipeline_mode<synchronous>, transform_indices = @transform_2, window_bounds = array<i64: 1, 256>}, {pipeline_mode = #tpu.pipeline_mode<synchronous>, transform_indices = @transform_3, window_bounds = array<i64: 256, 128>}, {pipeline_mode = #tpu.pipeline_mode<synchronous>, transform_indices = @transform_4, window_bounds = array<i64: 1, 128>}, {transform_indices = @transform_5, window_bounds = array<i64: 16, 128>}]} {
    %c0 = arith.constant 0 : index
    %c0_0 = arith.constant 0 : index
    %0 = vector.load %arg1[%c0, %c0_0] : memref<16x32xbf16, #tpu.memory_space<vmem>>, vector<16x32xbf16>
    %c0_1 = arith.constant 0 : index
    %c0_2 = arith.constant 0 : index
    %1 = vector.load %arg2[%c0_1, %c0_2] : memref<32x256xbf16, #tpu.memory_space<vmem>>, vector<32x256xbf16>
    %cst = arith.constant dense<0.000000e+00> : vector<16x256xf32>
    %2 = tpu.matmul %0, %1, %cst {dimension_numbers = #tpu.dot_dimension_numbers<[1], [0], [0], [1], [0, 0, 1, 1], [], []>} : vector<16x32xbf16>, vector<32x256xbf16>, vector<16x256xf32> -> vector<16x256xf32>
    %c0_3 = arith.constant 0 : index
    %c0_4 = arith.constant 0 : index
    %3 = vector.load %arg3[%c0_3, %c0_4] : memref<1x256xf32, #tpu.memory_space<vmem>>, vector<1x256xf32>
    %4 = vector.broadcast %3 : vector<1x256xf32> to vector<16x256xf32>
    %5 = arith.addf %2, %4 : vector<16x256xf32>
    %cst_5 = arith.constant 0.000000e+00 : f32
    %6 = vector.broadcast %cst_5 : f32 to vector<16x256xf32>
    %7 = arith.maximumf %5, %6 : vector<16x256xf32>
    %8 = arith.truncf %7 : vector<16x256xf32> to vector<16x256xbf16>
    %c0_6 = arith.constant 0 : index
    %c0_7 = arith.constant 0 : index
    %9 = vector.load %arg4[%c0_6, %c0_7] : memref<256x128xbf16, #tpu.memory_space<vmem>>, vector<256x128xbf16>
    %cst_8 = arith.constant dense<0.000000e+00> : vector<16x128xf32>
    %10 = tpu.matmul %8, %9, %cst_8 {dimension_numbers = #tpu.dot_dimension_numbers<[1], [0], [0], [1], [0, 0, 1, 1], [], []>} : vector<16x256xbf16>, vector<256x128xbf16>, vector<16x128xf32> -> vector<16x128xf32>
    %c0_9 = arith.constant 0 : index
    %c0_10 = arith.constant 0 : index
    %11 = vector.load %arg5[%c0_9, %c0_10] : memref<1x128xf32, #tpu.memory_space<vmem>>, vector<1x128xf32>
    %12 = vector.broadcast %11 : vector<1x128xf32> to vector<16x128xf32>
    %13 = arith.addf %10, %12 : vector<16x128xf32>
    %c0_11 = arith.constant 0 : index
    %c0_12 = arith.constant 0 : index
    %14 = vector.load %arg6[%c0_11, %c0_12] : memref<16x128xf32, #tpu.memory_space<vmem>>, vector<16x128xf32>
    tpu.vector_store %arg6[%c0_11, %c0_12], %13 {strides = array<i32>} : memref<16x128xf32, #tpu.memory_space<vmem>>, vector<16x128xf32>,
    return
  }
  func.func @transform_0(%arg0: i32) -> (i32, i32) {
    %c0_i32 = arith.constant 0 : i32
    %c0_i32_0 = arith.constant 0 : i32
    return %arg0, %c0_i32 : i32, i32
  }
  func.func @transform_1(%arg0: i32) -> (i32, i32) {
    %c0_i32 = arith.constant 0 : i32
    %c0_i32_0 = arith.constant 0 : i32
    %c0_i32_1 = arith.constant 0 : i32
    return %c0_i32, %c0_i32_0 : i32, i32
  }
  func.func @transform_2(%arg0: i32) -> (i32, i32) {
    %c0_i32 = arith.constant 0 : i32
    %c0_i32_0 = arith.constant 0 : i32
    %c0_i32_1 = arith.constant 0 : i32
    return %c0_i32, %c0_i32_0 : i32, i32
  }
  func.func @transform_3(%arg0: i32) -> (i32, i32) {
    %c0_i32 = arith.constant 0 : i32
    %c0_i32_0 = arith.constant 0 : i32
    %c0_i32_1 = arith.constant 0 : i32
    return %c0_i32, %c0_i32_0 : i32, i32
  }
  func.func @transform_4(%arg0: i32) -> (i32, i32) {
    %c0_i32 = arith.constant 0 : i32
    %c0_i32_0 = arith.constant 0 : i32
    %c0_i32_1 = arith.constant 0 : i32
    return %c0_i32, %c0_i32_0 : i32, i32
  }
  func.func @transform_5(%arg0: i32) -> (i32, i32) {
    %c0_i32 = arith.constant 0 : i32
    %c0_i32_0 = arith.constant 0 : i32
    return %arg0, %c0_i32 : i32, i32
  }
}

module attributes {stable_mosaic.version = 11 : i64} {
  func.func @_fused_mlp_kernel(%arg0: i32, %arg1: memref<16x32xbf16, #tpu.memory_space<vmem>>, %arg2: memref<32x256xbf16, #tpu.memory_space<vmem>>, %arg3: memref<1x256xf32, #tpu.memory_space<vmem>>, %arg4: memref<256x128xbf16, #tpu.memory_space<vmem>>, %arg5: memref<1x128xf32, #tpu.memory_space<vmem>>, %arg6: memref<16x128xf32, #tpu.memory_space<vmem>>) attributes {dimension_semantics = [#tpu.dimension_semantics<parallel>], iteration_bounds = array<i64: 1>, scalar_prefetch = 0 : i64, scratch_operands = 0 : i64, tpu.core_type = #tpu.core_type<tc>, window_params = [{transform_indices = @transform_0, window_bounds = array<i64: 16, 32>}, {pipeline_mode = #tpu.pipeline_mode<synchronous>, transform_indices = @transform_1, window_bounds = array<i64: 32, 256>}, {pipeline_mode = #tpu.pipeline_mode<synchronous>, transform_indices = @transform_2, window_bounds = array<i64: 1, 256>}, {pipeline_mode = #tpu.pipeline_mode<synchronous>, transform_indices = @transform_3, window_bounds = array<i64: 256, 128>}, {pipeline_mode = #tpu.pipeline_mode<synchronous>, transform_indices = @transform_4, window_bounds = array<i64: 1, 128>}, {transform_indices = @transform_5, window_bounds = array<i64: 16, 128>}]} {
    %c0 = arith.constant 0 : index
    %c0_0 = arith.constant 0 : index
    %0 = vector.load %arg1[%c0, %c0_0] : memref<16x32xbf16, #tpu.memory_space<vmem>>, vector<16x32xbf16>
    %c0_1 = arith.constant 0 : index
    %c0_2 = arith.constant 0 : index
    %1 = vector.load %arg2[%c0_1, %c0_2] : memref<32x256xbf16, #tpu.memory_space<vmem>>, vector<32x256xbf16>
    %cst = arith.constant dense<0.000000e+00> : vector<16x256xf32>
    %2 = tpu.matmul %0, %1, %cst {dimension_numbers = #tpu.dot_dimension_numbers<[1], [0], [0], [1], [0, 0, 1, 1], [], []>} : vector<16x32xbf16>, vector<32x256xbf16>, vector<16x256xf32> -> vector<16x256xf32>
    %c0_3 = arith.constant 0 : index
    %c0_4 = arith.constant 0 : index
    %3 = vector.load %arg3[%c0_3, %c0_4] : memref<1x256xf32, #tpu.memory_space<vmem>>, vector<1x256xf32>
    %4 = vector.broadcast %3 : vector<1x256xf32> to vector<16x256xf32>
    %5 = arith.addf %2, %4 : vector<16x256xf32>
    %cst_5 = arith.constant 0.000000e+00 : f32
    %6 = vector.broadcast %cst_5 : f32 to vector<16x256xf32>
    %7 = arith.maximumf %5, %6 : vector<16x256xf32>
    %8 = arith.truncf %7 : vector<16x256xf32> to vector<16x256xbf16>
    %c0_6 = arith.constant 0 : index
    %c0_7 = arith.constant 0 : index
    %9 = vector.load %arg4[%c0_6, %c0_7] : memref<256x128xbf16, #tpu.memory_space<vmem>>, vector<256x128xbf16>
    %cst_8 = arith.constant dense<0.000000e+00> : vector<16x128xf32>
    %10 = tpu.matmul %8, %9, %cst_8 {dimension_numbers = #tpu.dot_dimension_numbers<[1], [0], [0], [1], [0, 0, 1, 1], [], []>} : vector<16x256xbf16>, vector<256x128xbf16>, vector<16x128xf32> -> vector<16x128xf32>
    %c0_9 = arith.constant 0 : index
    %c0_10 = arith.constant 0 : index
    %11 = vector.load %arg5[%c0_9, %c0_10] : memref<1x128xf32, #tpu.memory_space<vmem>>, vector<1x128xf32>
    %12 = vector.broadcast %11 : vector<1x128xf32> to vector<16x128xf32>
    %13 = arith.addf %10, %12 : vector<16x128xf32>
    %c0_11 = arith.constant 0 : index
    %c0_12 = arith.constant 0 : index
    %14 = vector.load %arg6[%c0_11, %c0_12] : memref<16x128xf32, #tpu.memory_space<vmem>>, vector<16x128xf32>
    tpu.vector_store %arg6[%c0_11, %c0_12], %13 {strides = array<i32>} : memref<16x128xf32, #tpu.memory_space<vmem>>, vector<16x128xf32>,
    return
  }
  func.func @transform_0(%arg0: i32) -> (i32, i32) {
    %c0_i32 = arith.constant 0 : i32
    %c0_i32_0 = arith.constant 0 : i32
    return %arg0, %c0_i32 : i32, i32
  }
  func.func @transform_1(%arg0: i32) -> (i32, i32) {
    %c0_i32 = arith.constant 0 : i32
    %c0_i32_0 = arith.constant 0 : i32
    %c0_i32_1 = arith.constant 0 : i32
    return %c0_i32, %c0_i32_0 : i32, i32
  }
  func.func @transform_2(%arg0: i32) -> (i32, i32) {
    %c0_i32 = arith.constant 0 : i32
    %c0_i32_0 = arith.constant 0 : i32
    %c0_i32_1 = arith.constant 0 : i32
    return %c0_i32, %c0_i32_0 : i32, i32
  }
  func.func @transform_3(%arg0: i32) -> (i32, i32) {
    %c0_i32 = arith.constant 0 : i32
    %c0_i32_0 = arith.constant 0 : i32
    %c0_i32_1 = arith.constant 0 : i32
    return %c0_i32, %c0_i32_0 : i32, i32
  }
  func.func @transform_4(%arg0: i32) -> (i32, i32) {
    %c0_i32 = arith.constant 0 : i32
    %c0_i32_0 = arith.constant 0 : i32
    %c0_i32_1 = arith.constant 0 : i32
    return %c0_i32, %c0_i32_0 : i32, i32
  }
  func.func @transform_5(%arg0: i32) -> (i32, i32) {
    %c0_i32 = arith.constant 0 : i32
    %c0_i32_0 = arith.constant 0 : i32
    return %arg0, %c0_i32 : i32, i32
  }
}

</mosaic_0001>

<bundles_post_ra>
// kernel: tpu_custom_call.1
= control target key start
LH: loop header
LB: loop body
LE: loop exit
PB: predicated region body
PF: predicated region fallthrough
CT: control target
= control target key end

     0   :  { %10 = vsyncpa [#allocation3], 0  ;;  %s581_s0 = inlined_call_operand.hbm [shape: bf16[16,32], index: 0, kind: input, shape index: {}]   ;;  %s582_s1 = inlined_call_operand.hbm [shape: bf16[32,256], index: 1, kind: input, shape index: {}]   ;;  %s583_s2 = inlined_call_operand.vmem [shape: f32[1,256], index: 2, kind: input, shape index: {}]   ;;  %s584_s3 = inlined_call_operand.hbm [shape: bf16[256,128], index: 3, kind: input, shape index: {}]   ;;  %s585_s4 = inlined_call_operand.vmem [shape: f32[1,128], index: 4, kind: input, shape index: {}]   ;;  %s586_s5 = inlined_call_operand.hbm [shape: f32[16,128], index: 5, kind: output, shape index: {}]  }
   0x1   :  { %11 = vsyncpa [#allocation6], 0 }
   0x2   :  { %12 = vsyncpa [#allocation4], 0  ;;  %s518_s18 = smov [#allocation5]  }
   0x3   :  { %s30_s19 = sshll.u32 %s518_s18, 4  ;;  %s31_s19 = int_to_ptr.vmem [resolvable:$true] %s30_s19 }
   0x4   :  { %s440_s20 = scalar_lea.vmem %s31_s19, 512  ;;  %p445_p1 = scmp.lt.s32.totalorder %s31_s19, %s31_s19 }
   0x5   :  { %p441_p0 = scmp.ne.s32.totalorder %s31_s19, %s440_s20  ;;  %p446_p2 = scmp.lt.s32.totalorder %s440_s20, %s440_s20 }
   0x7   :  { %p447_p3 = por %p446_p2, %p445_p1 }
   0x9   :  { %p448_p4 = pnand %p447_p3, %p441_p0 }
   0xb   :  { %451 = shalt.err (!%p448_p4)
}
   0xc   :  { %s519_s21 = smov 128   ;;  %s520_s22 = smov 8  }
   0xd   :  { %36 = dma.hbm_to_vmem [thread:$0]  %s582_s1, 512, %s31_s19, [#allocation6], %s519_s21, %s519_s21, %s520_s22  }
   0xe   :  { %s521_s25 = smov [#allocation2]  }
   0xf   :  { %s18_s26 = sshll.u32 %s521_s25, 4  ;;  %s19_s26 = int_to_ptr.vmem [resolvable:$true] %s18_s26 }
  0x10   :  { %s460_s27 = scalar_lea.vmem %s19_s26, 128  ;;  %p465_p6 = scmp.lt.s32.totalorder %s19_s26, %s19_s26 }
  0x11   :  { %p461_p5 = scmp.ne.s32.totalorder %s19_s26, %s460_s27  ;;  %p466_p7 = scmp.lt.s32.totalorder %s460_s27, %s460_s27 }
  0x13   :  { %p467_p8 = por %p466_p7, %p465_p6 }
  0x15   :  { %p468_p9 = pnand %p467_p8, %p461_p5 }
  0x17   :  { %471 = shalt.err (!%p468_p9)
}
  0x18   :  { %s522_s28 = smov 64   ;;  %s523_s29 = smov 4  }
  0x19   :  { %24 = dma.hbm_to_vmem [thread:$0]  %s581_s0, 128, %s19_s26, [#allocation3], %s522_s28, %s522_s28, %s523_s29  }
  0x1a   :  { %s524_s7 = smov [#allocation7]  }
  0x1b   :  { %s44_s8 = sshll.u32 %s524_s7, 4  ;;  %s45_s8 = int_to_ptr.vmem [resolvable:$true] %s44_s8 }
  0x1c   :  { %s480_s1 = scalar_lea.vmem %s45_s8, 2048  ;;  %p485_p11 = scmp.lt.s32.totalorder %s45_s8, %s45_s8 }
  0x1d   :  { %p481_p10 = scmp.ne.s32.totalorder %s45_s8, %s480_s1  ;;  %p486_p12 = scmp.lt.s32.totalorder %s480_s1, %s480_s1 }
  0x1f   :  { %p487_p13 = por %p486_p12, %p485_p11 }
  0x21   :  { %p488_p0 = pnand %p487_p13, %p481_p10 }
  0x23   :  { %491 = shalt.err (!%p488_p0)
}
  0x24   :  { %50 = dma.hbm_to_vmem [thread:$0]  %s584_s3, 2048, %s45_s8, [#allocation6], %s522_s28, %s522_s28, %s523_s29  }
  0x25   :  { %512 = dma.done.wait [#allocation3], 128  }
  0x26   :  { %513 = vsyncadd [#allocation3], 4294967168 }
  0x27   :  { %514 = dma.done.wait [#allocation6], 2560  }
  0x28   :  { %515 = vsyncadd [#allocation6], 4294964736  ;;  %v525_v0 = vmov 0   ;;  %v409_v1 = vld [vmem:[#allocation5 + $0x14] ss:$8 sps:$4 sm:$0xff]   ;;  %vm106_vm0 = vcmask 261120   ;;  %v71_v22 = vlaneseq }
  0x29   :  { %142 = vmatprep.mubr.bf16.mxu0 %v525_v0  ;;  %v411_v2 = vld [vmem:[#allocation5 + $0x10] ss:$8 sps:$4 sm:$0xff]   ;;  %122 = vmatprep.subr.bf16.mxu0 %v409_v1  ;;  %v412_v3 = vld [vmem:[#allocation5 + $0x4] ss:$8 sps:$4 sm:$0xff]   ;;  %v414_v4 = vld [vmem:[#allocation5] ss:$8 sps:$4 sm:$0xff]  }
  0x2a   :  { %123 = vmatpush1.bf16.msra.mxu0 %v411_v2  ;;  %v415_v5 = vld [vmem:[#allocation2] sm:$0xff]   ;;  %v418_v8 = vld [vmem:[#allocation7 + $0x70] sm:$0xff]   ;;  %v420_v10 = vld [vmem:[#allocation7 + $0x68] sm:$0xff]   ;;  %v72_v23 = vshrl.u32 %v71_v22, 7  ;;  %s526_s12 = smov [#allocation8]  }
  0x2b   :  { %124 = vmatprep.subr.bf16.mxu0 %v412_v3  ;;  %v416_v6 = vld [vmem:[#allocation7 + $0x78] sm:$0xff]   ;;  %v419_v9 = vld [vmem:[#allocation7 + $0x30] sm:$0xff]   ;;  %v421_v11 = vld [vmem:[#allocation7 + $0x28] sm:$0xff]   ;;  %s342_s13 = sshll.u32 %s526_s12, 4  ;;  %s343_s13 = int_to_ptr.vmem [resolvable:$true] %s342_s13 }
  0x2c   :  { %v417_v7 = vld [vmem:[#allocation7 + $0x38] sm:$0xff]   ;;  %378 = vmatprep.subr.bf16.mxu1 %v416_v6  ;;  %v422_v12 = vld [vmem:[#allocation7 + $0x60] sm:$0xff]   ;;  %v426_v16 = vld [vmem:[#allocation7 + $0x50] sm:$0xff]   ;;  %v77_v24 = vsub.s32 1, %v72_v23  ;;  %v73_v25 = vsub.s32 0, %v72_v23  ;;  %s492_s14 = scalar_lea.vmem %s343_s13, 256  ;;  %p497_p2 = scmp.lt.s32.totalorder %s343_s13, %s343_s13 }
  0x2d   :  { %379 = vmatpush3.bf16.msra.mxu1 %v417_v7  ;;  %v423_v13 = vld [vmem:[#allocation7 + $0x20] sm:$0xff]   ;;  %v424_v14 = vld [vmem:[#allocation7 + $0x58] sm:$0xff]   ;;  %v427_v17 = vld [vmem:[#allocation7 + $0x10] sm:$0xff]   ;;  %p493_p1 = scmp.ne.s32.totalorder %s343_s13, %s492_s14  ;;  %p498_p3 = scmp.lt.s32.totalorder %s492_s14, %s492_s14 }
  0x2e   :  { %125 = vmatpush1.bf16.msra.mxu0 %v414_v4  ;;  %380 = vmatprep.subr.bf16.mxu1 %v418_v8  ;;  %v425_v15 = vld [vmem:[#allocation7 + $0x18] sm:$0xff]   ;;  %v428_v18 = vld [vmem:[#allocation7 + $0x48] sm:$0xff]   ;;  %v430_v20 = vld [vmem:[#allocation7 + $0x40] sm:$0xff]  }
  0x2f   :  { %v429_v19 = vld [vmem:[#allocation7 + $0x8] sm:$0xff]   ;;  %v431_v21 = vld [vmem:[#allocation7] sm:$0xff]   ;;  %v69_v26 = vld [vmem:[%s583_s2] sm:$0x3]  ;;  %p499_p4 = por %p498_p3, %p497_p2 }
  0x30   :  { %v78_v28 = vrot.slane %v69_v26, %v77_v24  ;;  %v74_v29 = vrot.slane %v69_v26, %v73_v25  ;;  %v361_v44 = vld [vmem:[%s585_s4] ss:$0 sm:$0xff] }
  0x31   :  { %360 = vmatmul.mubr.msk.bf16.vlgmr.msra.gmra.mxu0 %vm106_vm0, %v415_v5  ;;  %381 = vmatpush3.bf16.msra.mxu1 %v419_v9  ;;  %p500_p5 = pnand %p499_p4, %p493_p1 }
  0x32   :  { %382 = vmatprep.subr.bf16.mxu1 %v420_v10 }
  0x35   :  { %383 = vmatpush3.bf16.msra.mxu1 %v421_v11 }
  0x36   :  { %384 = vmatprep.subr.bf16.mxu1 %v422_v12 }
  0x39   :  { %385 = vmatpush3.bf16.msra.mxu1 %v423_v13 }
  0x3a   :  { %386 = vmatprep.subr.bf16.mxu1 %v424_v14 }
  0x3d   :  { %387 = vmatpush3.bf16.msra.mxu1 %v425_v15 }
  0x3e   :  { %388 = vmatprep.subr.bf16.mxu1 %v426_v16 }
  0x41   :  { %389 = vmatpush3.bf16.msra.mxu1 %v427_v17 }
  0x42   :  { %390 = vmatprep.subr.bf16.mxu1 %v428_v18 }
  0x45   :  { %391 = vmatpush3.bf16.msra.mxu1 %v429_v19 }
  0x46   :  { %392 = vmatprep.subr.bf16.mxu1 %v430_v20 }
  0x49   :  { %393 = vmatpush3.bf16.msra.mxu1 %v431_v21 }
  0xf1   :  { %v144_v27 = vpop.f32.mrf.mxu0 }
  0xf2   :  { %v145_v34 = vadd.f32 %v144_v27, %v74_v29 }
  0xf3   :  { %v146_v30 = vpop.f32.mrf.mxu0 }
  0xf4   :  { %v147_v32 = vadd.f32 %v146_v30, %v78_v28  ;;  %v153_v40 = vmax.f32 %v145_v34, 0.0 }
  0xf5   :  { %v148_v31 = vpop.f32.mrf.mxu0 }
  0xf6   :  { %v149_v33 = vadd.f32 %v148_v31, %v74_v29  ;;  %v154_v38 = vmax.f32 %v147_v32, 0.0 }
  0xf7   :  { %v150_v35 = vpop.f32.mrf.mxu0 }
  0xf8   :  { %v151_v36 = vadd.f32 %v150_v35, %v78_v28  ;;  %v155_v37 = vmax.f32 %v149_v33, 0.0 }
  0xfa   :  { %v156_v39 = vmax.f32 %v151_v36, 0.0  ;;  %v157_v42 = vpack.c.bf16 %v155_v37, %v153_v40 }
  0xfc   :  { %v158_v41 = vpack.c.bf16 %v156_v39, %v154_v38 }
  0xfe   :  { %326 = vmatprep.mubr.bf16.mxu1 %v158_v41 }
  0xff   :  { %327 = vmatmul.mubr.bf16.vlgmr.msra.gmra.mxu1 %v157_v42 }
 0x1bf   :  { %v394_v43 = vpop.f32.mrf.mxu1 }
 0x1c1   :  { %v395_v45 = vpop.f32.mrf.mxu1 }
 0x1c2   :  { %v396_v46 = vadd.f32 %v395_v45, %v394_v43 }
 0x1c3   :  { %v397_v47 = vpop.f32.mrf.mxu1 }
 0x1c4   :  { %v329_v48 = vadd.f32 %v396_v46, %v361_v44 }
 0x1c5   :  { %v398_v49 = vpop.f32.mrf.mxu1 }
 0x1c6   :  { %335 = vst [vmem:[#allocation8] sm:$0xff] %v329_v48  ;;  %v399_v50 = vadd.f32 %v398_v49, %v397_v47 }
 0x1c8   :  { %v332_v51 = vadd.f32 %v399_v50, %v361_v44 }
 0x1ca   :  { %336 = vst [vmem:[#allocation8 + $0x8] sm:$0xff] %v332_v51 }
 0x1cb   :  { %503 = shalt.err (!%p500_p5)
}
 0x1cc   :  { %348 = dma.vmem_to_hbm [thread:$0]  %s343_s13, 256, %s586_s5, [#allocation4], %s519_s21, %s519_s21, %s520_s22  }
 0x1cd   :  { %516 = dma.done.wait [#allocation4], 256  }
 0x1ce   :  { %517 = vsyncadd [#allocation4], 4294967040 }
 0x1cf   :  { %352 = vsyncpa [#allocation3], 1 }
 0x1d0   :  { %353 = vsyncpa [#allocation6], 1 }
 0x1d1   :  { %354 = vsyncpa [#allocation4], 1 }

// kernel: tpu_custom_call.1
= control target key start
LH: loop header
LB: loop body
LE: loop exit
PB: predicated region body
PF: predicated region fallthrough
CT: control target
= control target key end

     0   :  { %10 = vsyncpa [#allocation3], 0  ;;  %s581_s0 = inlined_call_operand.hbm [shape: bf16[16,32], index: 0, kind: input, shape index: {}]   ;;  %s582_s1 = inlined_call_operand.hbm [shape: bf16[32,256], index: 1, kind: input, shape index: {}]   ;;  %s583_s2 = inlined_call_operand.vmem [shape: f32[1,256], index: 2, kind: input, shape index: {}]   ;;  %s584_s3 = inlined_call_operand.hbm [shape: bf16[256,128], index: 3, kind: input, shape index: {}]   ;;  %s585_s4 = inlined_call_operand.vmem [shape: f32[1,128], index: 4, kind: input, shape index: {}]   ;;  %s586_s5 = inlined_call_operand.hbm [shape: f32[16,128], index: 5, kind: output, shape index: {}]  }
   0x1   :  { %11 = vsyncpa [#allocation6], 0 }
   0x2   :  { %12 = vsyncpa [#allocation4], 0  ;;  %s518_s18 = smov [#allocation5]  }
   0x3   :  { %s30_s19 = sshll.u32 %s518_s18, 4  ;;  %s31_s19 = int_to_ptr.vmem [resolvable:$true] %s30_s19 }
   0x4   :  { %s440_s20 = scalar_lea.vmem %s31_s19, 512  ;;  %p445_p1 = scmp.lt.s32.totalorder %s31_s19, %s31_s19 }
   0x5   :  { %p441_p0 = scmp.ne.s32.totalorder %s31_s19, %s440_s20  ;;  %p446_p2 = scmp.lt.s32.totalorder %s440_s20, %s440_s20 }
   0x7   :  { %p447_p3 = por %p446_p2, %p445_p1 }
   0x9   :  { %p448_p4 = pnand %p447_p3, %p441_p0 }
   0xb   :  { %451 = shalt.err (!%p448_p4)
}
   0xc   :  { %s519_s21 = smov 128   ;;  %s520_s22 = smov 8  }
   0xd   :  { %36 = dma.hbm_to_vmem [thread:$0]  %s582_s1, 512, %s31_s19, [#allocation6], %s519_s21, %s519_s21, %s520_s22  }
   0xe   :  { %s521_s25 = smov [#allocation2]  }
   0xf   :  { %s18_s26 = sshll.u32 %s521_s25, 4  ;;  %s19_s26 = int_to_ptr.vmem [resolvable:$true] %s18_s26 }
  0x10   :  { %s460_s27 = scalar_lea.vmem %s19_s26, 128  ;;  %p465_p6 = scmp.lt.s32.totalorder %s19_s26, %s19_s26 }
  0x11   :  { %p461_p5 = scmp.ne.s32.totalorder %s19_s26, %s460_s27  ;;  %p466_p7 = scmp.lt.s32.totalorder %s460_s27, %s460_s27 }
  0x13   :  { %p467_p8 = por %p466_p7, %p465_p6 }
  0x15   :  { %p468_p9 = pnand %p467_p8, %p461_p5 }
  0x17   :  { %471 = shalt.err (!%p468_p9)
}
  0x18   :  { %s522_s28 = smov 64   ;;  %s523_s29 = smov 4  }
  0x19   :  { %24 = dma.hbm_to_vmem [thread:$0]  %s581_s0, 128, %s19_s26, [#allocation3], %s522_s28, %s522_s28, %s523_s29  }
  0x1a   :  { %s524_s7 = smov [#allocation7]  }
  0x1b   :  { %s44_s8 = sshll.u32 %s524_s7, 4  ;;  %s45_s8 = int_to_ptr.vmem [resolvable:$true] %s44_s8 }
  0x1c   :  { %s480_s1 = scalar_lea.vmem %s45_s8, 2048  ;;  %p485_p11 = scmp.lt.s32.totalorder %s45_s8, %s45_s8 }
  0x1d   :  { %p481_p10 = scmp.ne.s32.totalorder %s45_s8, %s480_s1  ;;  %p486_p12 = scmp.lt.s32.totalorder %s480_s1, %s480_s1 }
  0x1f   :  { %p487_p13 = por %p486_p12, %p485_p11 }
  0x21   :  { %p488_p0 = pnand %p487_p13, %p481_p10 }
  0x23   :  { %491 = shalt.err (!%p488_p0)
}
  0x24   :  { %50 = dma.hbm_to_vmem [thread:$0]  %s584_s3, 2048, %s45_s8, [#allocation6], %s522_s28, %s522_s28, %s523_s29  }
  0x25   :  { %512 = dma.done.wait [#allocation3], 128  }
  0x26   :  { %513 = vsyncadd [#allocation3], 4294967168 }
  0x27   :  { %514 = dma.done.wait [#allocation6], 2560  }
  0x28   :  { %515 = vsyncadd [#allocation6], 4294964736  ;;  %v525_v0 = vmov 0   ;;  %v409_v1 = vld [vmem:[#allocation5 + $0x14] ss:$8 sps:$4 sm:$0xff]   ;;  %vm106_vm0 = vcmask 261120   ;;  %v71_v22 = vlaneseq }
  0x29   :  { %142 = vmatprep.mubr.bf16.mxu0 %v525_v0  ;;  %v411_v2 = vld [vmem:[#allocation5 + $0x10] ss:$8 sps:$4 sm:$0xff]   ;;  %122 = vmatprep.subr.bf16.mxu0 %v409_v1  ;;  %v412_v3 = vld [vmem:[#allocation5 + $0x4] ss:$8 sps:$4 sm:$0xff]   ;;  %v414_v4 = vld [vmem:[#allocation5] ss:$8 sps:$4 sm:$0xff]  }
  0x2a   :  { %123 = vmatpush1.bf16.msra.mxu0 %v411_v2  ;;  %v415_v5 = vld [vmem:[#allocation2] sm:$0xff]   ;;  %v418_v8 = vld [vmem:[#allocation7 + $0x70] sm:$0xff]   ;;  %v420_v10 = vld [vmem:[#allocation7 + $0x68] sm:$0xff]   ;;  %v72_v23 = vshrl.u32 %v71_v22, 7  ;;  %s526_s12 = smov [#allocation8]  }
  0x2b   :  { %124 = vmatprep.subr.bf16.mxu0 %v412_v3  ;;  %v416_v6 = vld [vmem:[#allocation7 + $0x78] sm:$0xff]   ;;  %v419_v9 = vld [vmem:[#allocation7 + $0x30] sm:$0xff]   ;;  %v421_v11 = vld [vmem:[#allocation7 + $0x28] sm:$0xff]   ;;  %s342_s13 = sshll.u32 %s526_s12, 4  ;;  %s343_s13 = int_to_ptr.vmem [resolvable:$true] %s342_s13 }
  0x2c   :  { %v417_v7 = vld [vmem:[#allocation7 + $0x38] sm:$0xff]   ;;  %378 = vmatprep.subr.bf16.mxu1 %v416_v6  ;;  %v422_v12 = vld [vmem:[#allocation7 + $0x60] sm:$0xff]   ;;  %v426_v16 = vld [vmem:[#allocation7 + $0x50] sm:$0xff]   ;;  %v77_v24 = vsub.s32 1, %v72_v23  ;;  %v73_v25 = vsub.s32 0, %v72_v23  ;;  %s492_s14 = scalar_lea.vmem %s343_s13, 256  ;;  %p497_p2 = scmp.lt.s32.totalorder %s343_s13, %s343_s13 }
  0x2d   :  { %379 = vmatpush3.bf16.msra.mxu1 %v417_v7  ;;  %v423_v13 = vld [vmem:[#allocation7 + $0x20] sm:$0xff]   ;;  %v424_v14 = vld [vmem:[#allocation7 + $0x58] sm:$0xff]   ;;  %v427_v17 = vld [vmem:[#allocation7 + $0x10] sm:$0xff]   ;;  %p493_p1 = scmp.ne.s32.totalorder %s343_s13, %s492_s14  ;;  %p498_p3 = scmp.lt.s32.totalorder %s492_s14, %s492_s14 }
  0x2e   :  { %125 = vmatpush1.bf16.msra.mxu0 %v414_v4  ;;  %380 = vmatprep.subr.bf16.mxu1 %v418_v8  ;;  %v425_v15 = vld [vmem:[#allocation7 + $0x18] sm:$0xff]   ;;  %v428_v18 = vld [vmem:[#allocation7 + $0x48] sm:$0xff]   ;;  %v430_v20 = vld [vmem:[#allocation7 + $0x40] sm:$0xff]  }
  0x2f   :  { %v429_v19 = vld [vmem:[#allocation7 + $0x8] sm:$0xff]   ;;  %v431_v21 = vld [vmem:[#allocation7] sm:$0xff]   ;;  %v69_v26 = vld [vmem:[%s583_s2] sm:$0x3]  ;;  %p499_p4 = por %p498_p3, %p497_p2 }
  0x30   :  { %v78_v28 = vrot.slane %v69_v26, %v77_v24  ;;  %v74_v29 = vrot.slane %v69_v26, %v73_v25  ;;  %v361_v44 = vld [vmem:[%s585_s4] ss:$0 sm:$0xff] }
  0x31   :  { %360 = vmatmul.mubr.msk.bf16.vlgmr.msra.gmra.mxu0 %vm106_vm0, %v415_v5  ;;  %381 = vmatpush3.bf16.msra.mxu1 %v419_v9  ;;  %p500_p5 = pnand %p499_p4, %p493_p1 }
  0x32   :  { %382 = vmatprep.subr.bf16.mxu1 %v420_v10 }
  0x35   :  { %383 = vmatpush3.bf16.msra.mxu1 %v421_v11 }
  0x36   :  { %384 = vmatprep.subr.bf16.mxu1 %v422_v12 }
  0x39   :  { %385 = vmatpush3.bf16.msra.mxu1 %v423_v13 }
  0x3a   :  { %386 = vmatprep.subr.bf16.mxu1 %v424_v14 }
  0x3d   :  { %387 = vmatpush3.bf16.msra.mxu1 %v425_v15 }
  0x3e   :  { %388 = vmatprep.subr.bf16.mxu1 %v426_v16 }
  0x41   :  { %389 = vmatpush3.bf16.msra.mxu1 %v427_v17 }
  0x42   :  { %390 = vmatprep.subr.bf16.mxu1 %v428_v18 }
  0x45   :  { %391 = vmatpush3.bf16.msra.mxu1 %v429_v19 }
  0x46   :  { %392 = vmatprep.subr.bf16.mxu1 %v430_v20 }
  0x49   :  { %393 = vmatpush3.bf16.msra.mxu1 %v431_v21 }
  0xf1   :  { %v144_v27 = vpop.f32.mrf.mxu0 }
  0xf2   :  { %v145_v34 = vadd.f32 %v144_v27, %v74_v29 }
  0xf3   :  { %v146_v30 = vpop.f32.mrf.mxu0 }
  0xf4   :  { %v147_v32 = vadd.f32 %v146_v30, %v78_v28  ;;  %v153_v40 = vmax.f32 %v145_v34, 0.0 }
  0xf5   :  { %v148_v31 = vpop.f32.mrf.mxu0 }
  0xf6   :  { %v149_v33 = vadd.f32 %v148_v31, %v74_v29  ;;  %v154_v38 = vmax.f32 %v147_v32, 0.0 }
  0xf7   :  { %v150_v35 = vpop.f32.mrf.mxu0 }
  0xf8   :  { %v151_v36 = vadd.f32 %v150_v35, %v78_v28  ;;  %v155_v37 = vmax.f32 %v149_v33, 0.0 }
  0xfa   :  { %v156_v39 = vmax.f32 %v151_v36, 0.0  ;;  %v157_v42 = vpack.c.bf16 %v155_v37, %v153_v40 }
  0xfc   :  { %v158_v41 = vpack.c.bf16 %v156_v39, %v154_v38 }
  0xfe   :  { %326 = vmatprep.mubr.bf16.mxu1 %v158_v41 }
  0xff   :  { %327 = vmatmul.mubr.bf16.vlgmr.msra.gmra.mxu1 %v157_v42 }
 0x1bf   :  { %v394_v43 = vpop.f32.mrf.mxu1 }
 0x1c1   :  { %v395_v45 = vpop.f32.mrf.mxu1 }
 0x1c2   :  { %v396_v46 = vadd.f32 %v395_v45, %v394_v43 }
 0x1c3   :  { %v397_v47 = vpop.f32.mrf.mxu1 }
 0x1c4   :  { %v329_v48 = vadd.f32 %v396_v46, %v361_v44 }
 0x1c5   :  { %v398_v49 = vpop.f32.mrf.mxu1 }
 0x1c6   :  { %335 = vst [vmem:[#allocation8] sm:$0xff] %v329_v48  ;;  %v399_v50 = vadd.f32 %v398_v49, %v397_v47 }
 0x1c8   :  { %v332_v51 = vadd.f32 %v399_v50, %v361_v44 }
 0x1ca   :  { %336 = vst [vmem:[#allocation8 + $0x8] sm:$0xff] %v332_v51 }
 0x1cb   :  { %503 = shalt.err (!%p500_p5)
}
 0x1cc   :  { %348 = dma.vmem_to_hbm [thread:$0]  %s343_s13, 256, %s586_s5, [#allocation4], %s519_s21, %s519_s21, %s520_s22  }
 0x1cd   :  { %516 = dma.done.wait [#allocation4], 256  }
 0x1ce   :  { %517 = vsyncadd [#allocation4], 4294967040 }
 0x1cf   :  { %352 = vsyncpa [#allocation3], 1 }
 0x1d0   :  { %353 = vsyncpa [#allocation6], 1 }
 0x1d1   :  { %354 = vsyncpa [#allocation4], 1 }

</bundles_post_ra>
